<compile_context>
chip_gen: v7x
topology: tpu7x:2x2x1
jax: 0.10.0
libtpu: 0.0.40
codegen_flags: <defaults>
</compile_context>

<pallas_src>
import math

import jax
import jax.numpy as jnp
from jax.experimental import pallas as pl
from jax.experimental.pallas import tpu as pltpu


def sine_activation_kernel(tau_ref, w_ref, b_ref, mask_ref, out_ref):
    """One row-tile of the fused Time2Vec forward.

    tau_ref : (TMp, REP*F)   packed input rows              (streamed)
    w_ref   : (REP*F, REP*K) block-diagonal fused weight    (VMEM resident)
    b_ref   : (TMp, REP*K)   one-tile bias block            (VMEM resident)
    mask_ref: (1, REP*K)     int32; 1 -> sin column, 0 -> linear column
    out_ref : (TMp, REP*K)
    """
    y = jnp.dot(tau_ref[...], w_ref[...], preferred_element_type=jnp.float32)
    y = y + b_ref[...]
    m = jnp.broadcast_to(mask_ref[...], y.shape)
    out_ref[...] = jnp.where(m != 0, jnp.sin(y), y).astype(out_ref.dtype)


def _round_down(x, m):
    return (x // m) * m


def sine_activation(tau, w, b, w0, b0, *, target_rows=8192):
    B, S, F = tau.shape
    Km1 = w.shape[1]
    K = Km1 + 1
    M = B * S
    dt = tau.dtype

    # PyTorch broadcast quirk: b (F, K-1) is added to an (S, K-1) result, which
    # only makes sense when S == F (or F == 1).
    assert S == F or F == 1, (
        "SineActivation bias broadcast requires seq == in_features "
        f"(or in_features == 1); got seq={S}, in_features={F}"
    )

    # Fuse parameters once on the XLA side.
    w_full = jnp.concatenate([w, w0], axis=1).astype(dt)          # (F, K)
    b_full = jnp.concatenate([b, b0], axis=1).astype(dt)          # (F, K)

    # Lane-dense packing factor: pack REP consecutive rows per packed row so
    # the output last dim reaches >= 128 lanes (full vregs for sin + stores).
    REP = 1
    while REP * K < 128 and M % (2 * REP) == 0:
        REP *= 2
    FL, KL = REP * F, REP * K
    Mp = M // REP

    # Row-tile granularity: multiple of 8*REP (sublane rule on packed rows) and
    # of S (so the resident bias block is exact at every tile start).
    g_rows = 8 * REP
    if F != 1:
        g_rows = g_rows * S // math.gcd(g_rows, S)

    # Keep the per-tile VMEM footprint modest (input + output + bias blocks).
    bytes_per_row = (F + 2 * K) * jnp.dtype(dt).itemsize
    vmem_cap_rows = max(g_rows, _round_down(int((8 << 20) // bytes_per_row), g_rows))
    tgt = min(max(target_rows, g_rows), vmem_cap_rows)

    if M <= g_rows:
        TM_rows = M                                  # tiny problem: one block
    else:
        TM_rows = max(g_rows, min(_round_down(tgt, g_rows), _round_down(M, g_rows)))
        if pl.cdiv(M, TM_rows) < 2:                  # give both v7x cores work
            half = _round_down(pl.cdiv(M, 2), g_rows)
            if half >= g_rows:
                TM_rows = half
    TMp = TM_rows // REP
    grid = (pl.cdiv(Mp, TMp),)

    # Block-diagonal fused weight: packed-row matmul == REP independent rows.
    w_bd = jnp.kron(jnp.eye(REP, dtype=dt), w_full)               # (FL, KL)

    # One tile worth of bias, packed; VMEM-resident and reused by every tile
    # (tile starts are multiples of S, so the per-row pattern repeats exactly).
    if F == 1:
        bias_rows = jnp.broadcast_to(b_full, (TM_rows, K))
    else:
        bias_rows = jnp.broadcast_to(
            b_full[None, :, :], (TM_rows // S, S, K)
        ).reshape(TM_rows, K)
    bias_tile = bias_rows.reshape(TMp, KL)

    # Column mask: 1 -> sin (first K-1 of each K-group), 0 -> linear term.
    sin_mask = jnp.tile(
        jnp.concatenate([jnp.ones((Km1,), jnp.int32), jnp.zeros((1,), jnp.int32)]),
        (REP,),
    ).reshape(1, KL)

    tau_p = tau.reshape(Mp, FL)                                   # free reshape

    out_p = pl.pallas_call(
        sine_activation_kernel,
        out_shape=jax.ShapeDtypeStruct((Mp, KL), dt),
        grid_spec=pltpu.PrefetchScalarGridSpec(
            num_scalar_prefetch=0,
            grid=grid,
            in_specs=[
                pl.BlockSpec((TMp, FL), lambda i: (i, 0)),   # streamed input rows
                pl.BlockSpec((FL, KL), lambda i: (0, 0)),    # resident weight
                pl.BlockSpec((TMp, KL), lambda i: (0, 0)),   # resident bias tile
                pl.BlockSpec((1, KL), lambda i: (0, 0)),     # resident lane mask
            ],
            out_specs=pl.BlockSpec((TMp, KL), lambda i: (i, 0)),
        ),
        compiler_params=pltpu.CompilerParams(
            dimension_semantics=("parallel",),
        ),
    )(tau_p, w_bd, bias_tile, sin_mask)

    return out_p.reshape(B, S, K)


def sine_activation_ref(tau, w, b, w0, b0):
    v1 = jnp.sin(jnp.matmul(tau, w) + b)
    v2 = jnp.matmul(tau, w0) + b0
    return jnp.concatenate([v1, v2], axis=2)


if __name__ == "__main__":
    # Small deterministic setup consistent with the module:
    #   in_features = 16, out_features = 32, batch = 2, seq = 16 (== in_features)
    in_features = 16
    out_features = 32
    B, S = 2, in_features

    key = jax.random.PRNGKey(0)
    k_tau, k_w0, k_b0, k_w, k_b = jax.random.split(key, 5)

    tau = jax.random.normal(k_tau, (B, S, in_features), dtype=jnp.float32)
    w0 = jax.random.normal(k_w0, (in_features, 1), dtype=jnp.float32)
    b0 = jax.random.normal(k_b0, (in_features, 1), dtype=jnp.float32)
    w = jax.random.normal(k_w, (in_features, out_features - 1), dtype=jnp.float32)
    b = jax.random.normal(k_b, (in_features, out_features - 1), dtype=jnp.float32)

    out = jax.block_until_ready(sine_activation(tau, w, b, w0, b0))
    ref = sine_activation_ref(tau, w, b, w0, b0)

    assert out.shape == (B, S, out_features), out.shape
    assert jnp.allclose(out, ref, atol=1e-5, rtol=1e-5), float(
        jnp.max(jnp.abs(out - ref))
    )
    print("KERNEL_OK")
</pallas_src>

<mosaic_0001>
module attributes {stable_mosaic.version = 11 : i64} {
  func.func @sine_activation_kernel(%arg0: i32, %arg1: memref<8x64xf32, #tpu.memory_space<vmem>>, %arg2: memref<64x128xf32, #tpu.memory_space<vmem>>, %arg3: memref<8x128xf32, #tpu.memory_space<vmem>>, %arg4: memref<1x128xi32, #tpu.memory_space<vmem>>, %arg5: memref<8x128xf32, #tpu.memory_space<vmem>>) attributes {dimension_semantics = [#tpu.dimension_semantics<parallel>], iteration_bounds = array<i64: 1>, scalar_prefetch = 0 : i64, scratch_operands = 0 : i64, tpu.core_type = #tpu.core_type<tc>, window_params = [{transform_indices = @transform_0, window_bounds = array<i64: 8, 64>}, {pipeline_mode = #tpu.pipeline_mode<synchronous>, transform_indices = @transform_1, window_bounds = array<i64: 64, 128>}, {pipeline_mode = #tpu.pipeline_mode<synchronous>, transform_indices = @transform_2, window_bounds = array<i64: 8, 128>}, {pipeline_mode = #tpu.pipeline_mode<synchronous>, transform_indices = @transform_3, window_bounds = array<i64: 1, 128>}, {transform_indices = @transform_4, window_bounds = array<i64: 8, 128>}]} {
    %c0 = arith.constant 0 : index
    %c0_0 = arith.constant 0 : index
    %0 = vector.load %arg1[%c0, %c0_0] : memref<8x64xf32, #tpu.memory_space<vmem>>, vector<8x64xf32>
    %c0_1 = arith.constant 0 : index
    %c0_2 = arith.constant 0 : index
    %1 = vector.load %arg2[%c0_1, %c0_2] : memref<64x128xf32, #tpu.memory_space<vmem>>, vector<64x128xf32>
    %cst = arith.constant dense<0.000000e+00> : vector<8x128xf32>
    %2 = tpu.matmul %0, %1, %cst {dimension_numbers = #tpu.dot_dimension_numbers<[1], [0], [0], [1], [0, 0, 1, 1], [], []>} : vector<8x64xf32>, vector<64x128xf32>, vector<8x128xf32> -> vector<8x128xf32>
    %c0_3 = arith.constant 0 : index
    %c0_4 = arith.constant 0 : index
    %3 = vector.load %arg3[%c0_3, %c0_4] : memref<8x128xf32, #tpu.memory_space<vmem>>, vector<8x128xf32>
    %4 = arith.addf %2, %3 : vector<8x128xf32>
    %c0_5 = arith.constant 0 : index
    %c0_6 = arith.constant 0 : index
    %5 = vector.load %arg4[%c0_5, %c0_6] : memref<1x128xi32, #tpu.memory_space<vmem>>, vector<1x128xi32>
    %6 = vector.shape_cast %5 : vector<1x128xi32> to vector<1x128xi32>
    %7 = vector.broadcast %6 : vector<1x128xi32> to vector<8x128xi32>
    %c0_i32 = arith.constant 0 : i32
    %8 = vector.broadcast %c0_i32 : i32 to vector<8x128xi32>
    %9 = arith.cmpi ne, %7, %8 : vector<8x128xi32>
    %10 = math.sin %4 : vector<8x128xf32>
    %11 = arith.select %9, %10, %4 : vector<8x128xi1>, vector<8x128xf32>
    %c0_7 = arith.constant 0 : index
    %c0_8 = arith.constant 0 : index
    %12 = vector.load %arg5[%c0_7, %c0_8] : memref<8x128xf32, #tpu.memory_space<vmem>>, vector<8x128xf32>
    tpu.vector_store %arg5[%c0_7, %c0_8], %11 {strides = array<i32>} : memref<8x128xf32, #tpu.memory_space<vmem>>, vector<8x128xf32>,
    return
  }
  func.func @transform_0(%arg0: i32) -> (i32, i32) {
    %c0_i32 = arith.constant 0 : i32
    %c0_i32_0 = arith.constant 0 : i32
    return %arg0, %c0_i32 : i32, i32
  }
  func.func @transform_1(%arg0: i32) -> (i32, i32) {
    %c0_i32 = arith.constant 0 : i32
    %c0_i32_0 = arith.constant 0 : i32
    %c0_i32_1 = arith.constant 0 : i32
    return %c0_i32, %c0_i32_0 : i32, i32
  }
  func.func @transform_2(%arg0: i32) -> (i32, i32) {
    %c0_i32 = arith.constant 0 : i32
    %c0_i32_0 = arith.constant 0 : i32
    %c0_i32_1 = arith.constant 0 : i32
    return %c0_i32, %c0_i32_0 : i32, i32
  }
  func.func @transform_3(%arg0: i32) -> (i32, i32) {
    %c0_i32 = arith.constant 0 : i32
    %c0_i32_0 = arith.constant 0 : i32
    %c0_i32_1 = arith.constant 0 : i32
    return %c0_i32, %c0_i32_0 : i32, i32
  }
  func.func @transform_4(%arg0: i32) -> (i32, i32) {
    %c0_i32 = arith.constant 0 : i32
    %c0_i32_0 = arith.constant 0 : i32
    return %arg0, %c0_i32 : i32, i32
  }
}

</mosaic_0001>

<bundles_post_ra>
// kernel: tpu_custom_call.1
= control target key start
LH: loop header
LB: loop body
LE: loop exit
PB: predicated region body
PF: predicated region fallthrough
CT: control target
= control target key end

     0   :  { %9 = vsyncpa [#allocation3], 0  ;;  %s543_s0 = inlined_call_operand.hbm [shape: f32[8,64], index: 0, kind: input, shape index: {}]   ;;  %s544_s1 = inlined_call_operand.hbm [shape: f32[64,128], index: 1, kind: input, shape index: {}]   ;;  %s545_s2 = inlined_call_operand.hbm [shape: f32[8,128], index: 2, kind: input, shape index: {}]   ;;  %s546_s3 = inlined_call_operand.vmem [shape: s32[1,128], index: 3, kind: input, shape index: {}]   ;;  %s547_s4 = inlined_call_operand.hbm [shape: f32[8,128], index: 4, kind: output, shape index: {}]  }
   0x1   :  { %10 = vsyncpa [#allocation6], 0 }
   0x2   :  { %11 = vsyncpa [#allocation4], 0  ;;  %s430_s15 = smov [#allocation5]   ;;  %s336_s19 = scalar_lea.hbm %s544_s1, 1024 }
   0x3   :  { %s27_s16 = sshll.u32 %s430_s15, 4  ;;  %p337_p0 = scmp.ne.s32.totalorder %s544_s1, %s336_s19  ;;  %s28_s16 = int_to_ptr.vmem [resolvable:$true] %s27_s16 }
   0x4   :  { %p340_p1 = scmp.lt.u32.totalorder %s336_s19, %s544_s1 }
   0x6   :  { %p342_p2 = pnand %p340_p1, %p337_p0 }
   0x8   :  { %345 = shalt.err (!%p342_p2)
}
   0x9   :  { %s346_s24 = scalar_lea.vmem %s28_s16, 1024  ;;  %p351_p4 = scmp.lt.s32.totalorder %s28_s16, %s28_s16 }
   0xa   :  { %p347_p3 = scmp.ne.s32.totalorder %s28_s16, %s346_s24  ;;  %p352_p5 = scmp.lt.s32.totalorder %s346_s24, %s346_s24 }
   0xc   :  { %p353_p6 = por %p352_p5, %p351_p4 }
   0xe   :  { %p354_p7 = pnand %p353_p6, %p347_p3 }
  0x10   :  { %357 = shalt.err (!%p354_p7)
}
  0x11   :  { %s431_s25 = smov 128   ;;  %s432_s26 = smov 8  }
  0x12   :  { %33 = dma.hbm_to_vmem [thread:$0]  %s544_s1, 1024, %s28_s16, [#allocation6], %s431_s25, %s431_s25, %s432_s26  }
  0x13   :  { %s433_s29 = smov [#allocation2]   ;;  %s434_s5 = smov [#allocation7]  }
  0x14   :  { %s18_s30 = sshll.u32 %s433_s29, 4  ;;  %s40_s6 = sshll.u32 %s434_s5, 4  ;;  %s19_s30 = int_to_ptr.vmem [resolvable:$true] %s18_s30  ;;  %s41_s6 = int_to_ptr.vmem [resolvable:$true] %s40_s6 }
  0x15   :  { %s358_s9 = scalar_lea.hbm %s543_s0, 128 }
  0x16   :  { %p359_p8 = scmp.ne.s32.totalorder %s543_s0, %s358_s9  ;;  %p362_p9 = scmp.lt.u32.totalorder %s358_s9, %s543_s0 }
  0x18   :  { %p364_p10 = pnand %p362_p9, %p359_p8 }
  0x1a   :  { %367 = shalt.err (!%p364_p10)
}
  0x1b   :  { %s368_s1 = scalar_lea.vmem %s19_s30, 128  ;;  %p373_p12 = scmp.lt.s32.totalorder %s19_s30, %s19_s30 }
  0x1c   :  { %p369_p11 = scmp.ne.s32.totalorder %s19_s30, %s368_s1  ;;  %p374_p13 = scmp.lt.s32.totalorder %s368_s1, %s368_s1 }
  0x1e   :  { %p375_p0 = por %p374_p13, %p373_p12 }
  0x20   :  { %p376_p1 = pnand %p375_p0, %p369_p11 }
  0x22   :  { %379 = shalt.err (!%p376_p1)
}
  0x23   :  { %21 = dma.hbm_to_vmem [thread:$0]  %s543_s0, 128, %s19_s30, [#allocation3]  }
  0x24   :  { %s380_s18 = scalar_lea.hbm %s545_s2, 128 }
  0x25   :  { %p381_p2 = scmp.ne.s32.totalorder %s545_s2, %s380_s18  ;;  %p384_p3 = scmp.lt.u32.totalorder %s380_s18, %s545_s2 }
  0x27   :  { %p386_p4 = pnand %p384_p3, %p381_p2 }
  0x29   :  { %389 = shalt.err (!%p386_p4)
}
  0x2a   :  { %s390_s23 = scalar_lea.vmem %s41_s6, 128  ;;  %p395_p6 = scmp.lt.s32.totalorder %s41_s6, %s41_s6 }
  0x2b   :  { %p391_p5 = scmp.ne.s32.totalorder %s41_s6, %s390_s23  ;;  %p396_p7 = scmp.lt.s32.totalorder %s390_s23, %s390_s23 }
  0x2d   :  { %p397_p8 = por %p396_p7, %p395_p6 }
  0x2f   :  { %p398_p9 = pnand %p397_p8, %p391_p5 }
  0x31   :  { %401 = shalt.err (!%p398_p9)
}
  0x32   :  { %43 = dma.hbm_to_vmem [thread:$0]  %s545_s2, 128, %s41_s6, [#allocation6]  }
  0x33   :  { %424 = dma.done.wait [#allocation3], 128  }
  0x34   :  { %425 = vsyncadd [#allocation3], 4294967168 }
  0x35   :  { %426 = dma.done.wait [#allocation6], 1152  }
  0x36   :  { %427 = vsyncadd [#allocation6], 4294966144  ;;  %v435_v0 = vmov 0.0|0.0   ;;  %vm436_vm0 = vmmov 0   ;;  %v437_v1 = vmov 0.0   ;;  %v56_v2 = vld [vmem:[#allocation5] sm:$0xff] }
  0x37   :  { %301 = vmatprep.subr.bf16.mxu0 %v435_v0  ;;  %298 = vmatprep.mubr.msk.f32.mxu0 %vm436_vm0, %v437_v1  ;;  %v57_v3 = vld [vmem:[#allocation5 + $0x8] sm:$0xff]  ;;  %v58_v4 = vld [vmem:[#allocation5 + $0x10] sm:$0xff]  ;;  %v59_v6 = vld [vmem:[#allocation5 + $0x18] sm:$0xff]  ;;  %vm65_vm1 = vcmask 523264   ;;  %v438_v30 = vmov 2102212464  }
  0x38   :  { %v302_v5 = vpack.c.bf16 %v57_v3, %v56_v2  ;;  %v305_v7 = vpack.c.bf16 %v59_v6, %v58_v4  ;;  %v60_v8 = vld [vmem:[#allocation5 + $0x20] sm:$0xff]  ;;  %v61_v9 = vld [vmem:[#allocation5 + $0x28] sm:$0xff]  ;;  %v62_v11 = vld [vmem:[#allocation5 + $0x30] sm:$0xff]  ;;  %v439_v32 = vmov 920167782   ;;  %s444_s26 = smov [#allocation8]  }
  0x39   :  { %v308_v10 = vpack.c.bf16 %v61_v9, %v60_v8  ;;  %v63_v12 = vld [vmem:[#allocation5 + $0x38] sm:$0xff]  ;;  %v64_v15 = vld [vmem:[#allocation7] sm:$0xff]  ;;  %v440_v36 = vmov 1326507024   ;;  %v441_v38 = vmov 683565275  }
  0x3a   :  { %303 = vmatpush3.bf16.msra.mxu0 %v302_v5  ;;  %v311_v13 = vpack.c.bf16 %v63_v12, %v62_v11  ;;  %v55_v14 = vld [vmem:[#allocation2] sm:$0xff]  ;;  %v442_v40 = vmov 2475754826   ;;  %v443_v43 = vmov 2131351028   ;;  %s257_s27 = sshll.u32 %s444_s26, 4  ;;  %s258_s27 = int_to_ptr.vmem [resolvable:$true] %s257_s27 }
  0x3b   :  { %304 = vmatprep.subr.bf16.mxu0 %v435_v0  ;;  %s402_s28 = scalar_lea.vmem %s258_s27, 128  ;;  %p407_p11 = scmp.lt.s32.totalorder %s258_s27, %s258_s27 }
  0x3c   :  { %p403_p10 = scmp.ne.s32.totalorder %s258_s27, %s402_s28  ;;  %p408_p12 = scmp.lt.s32.totalorder %s402_s28, %s402_s28 }
  0x3e   :  { %306 = vmatpush3.bf16.msra.mxu0 %v305_v7  ;;  %p409_p13 = por %p408_p12, %p407_p11 }
  0x3f   :  { %307 = vmatprep.subr.bf16.mxu0 %v435_v0 }
  0x40   :  { %p410_p0 = pnand %p409_p13, %p403_p10 }
  0x42   :  { %309 = vmatpush3.bf16.msra.mxu0 %v308_v10 }
  0x43   :  { %310 = vmatprep.subr.bf16.mxu0 %v435_v0 }
  0x46   :  { %312 = vmatpush3.bf16.msra.mxu0 %v311_v13 }
  0x49   :  { %299 = vmatmul.mubr.msk.f32.vlgmr.msra.gmra.mrb[0].mxu0 %vm65_vm1, %v55_v14 }
 0x11c   :  { %v135_v16 = vpop.f32.mrb[0].mxu0 }
 0x11d   :  { %v506_v17 = vadd.f32 %v135_v16, %v64_v15  ;;  %v300_v18 = vpop.f32.mrb[1].mxu0 }
 0x11f   :  { %v148_v19 = vand.u32 2139095040, %v506_v17  ;;  %v145_v20 = vand.u32 2147483647, %v506_v17  ;;  %vm147_vm9 = vcmp.lt.s32.totalorder %v506_v17, 0  ;;  %vm237_vm15 = vweird.f32 %v506_v17 }
 0x121   :  { %v149_v21 = vshrl.u32 %v148_v19, 23  ;;  %v152_v23 = vand.u32 8388607, %v145_v20  ;;  %vm146_vm10 = vcmp.le.f32.partialorder %v145_v20, 0.7853982 }
 0x123   :  { %v269_v22 = vadd.s32 4294967169, %v149_v21  ;;  %v153_v26 = vor.u32 8388608, %v152_v23 }
 0x125   :  { %v155_v24 = vadd.s32 1, %v269_v22  ;;  %v193_v34 = vshll.u32 %v153_v26, 8 }
 0x127   :  { %vm156_vm2 = vcmp.gt.s32.totalorder %v155_v24, 0 }
 0x128   :  { %v157_v25 = vsel %vm156_vm2, %v155_v24, 0 }
 0x129   :  { %v159_v27 = vand.u32 31, %v157_v25  ;;  %v158_v28 = vshrl.u32 %v157_v25, 5 }
 0x12b   :  { %v160_v29 = vsub.s32 32, %v159_v27  ;;  %v171_v31 = vshll.u32 %v438_v30, %v159_v27  ;;  %v174_v33 = vshll.u32 %v439_v32, %v159_v27  ;;  %v162_v39 = vshll.u32 %v441_v38, %v159_v27 }
 0x12c   :  { %v165_v42 = vshll.u32 %v442_v40, %v159_v27  ;;  %v168_v45 = vshll.u32 %v443_v43, %v159_v27  ;;  %vm180_vm3 = vcmp.lt.s32.totalorder %v158_v28, 4  ;;  %vm177_vm4 = vcmp.lt.s32.totalorder %v158_v28, 1 }
 0x12d   :  { %v172_v35 = vshrl.u32 %v439_v32, %v160_v29  ;;  %v175_v37 = vshrl.u32 %v440_v36, %v160_v29  ;;  %v163_v41 = vshrl.u32 %v442_v40, %v160_v29  ;;  %v166_v44 = vshrl.u32 %v443_v43, %v160_v29 }
 0x12e   :  { %v169_v46 = vshrl.u32 %v438_v30, %v160_v29  ;;  %v161_v50 = vshrl.u32 %v441_v38, %v160_v29  ;;  %vm178_vm5 = vcmp.lt.s32.totalorder %v158_v28, 2  ;;  %vm179_vm6 = vcmp.lt.s32.totalorder %v158_v28, 3 }
 0x12f   :  { %v173_v47 = vor.u32 %v172_v35, %v171_v31  ;;  %v176_v48 = vor.u32 %v175_v37, %v174_v33  ;;  %v164_v49 = vor.u32 %v163_v41, %v162_v39  ;;  %v167_v51 = vor.u32 %v166_v44, %v165_v42  ;;  %v268_v42 = vld [vmem:[%s546_s3] ss:$0 sm:$0xff] }
 0x130   :  { %v170_v52 = vor.u32 %v169_v46, %v168_v45  ;;  %vm144_vm13 = vcmp.ne.s32.totalorder %v268_v42, 0 }
 0x131   :  { %v186_v53 = vsel %vm180_vm3, %v173_v47, 920167782  ;;  %v190_v54 = vsel %vm180_vm3, %v176_v48, 1326507024  ;;  %v185_v56 = vsel %vm177_vm4, %v164_v49, %v167_v51  ;;  %v181_v59 = vsel %vm177_vm4, %v161_v50, %v164_v49 }
 0x132   :  { %v182_v55 = vsel %vm180_vm3, %v170_v52, 2102212464  ;;  %v187_v57 = vsel %vm179_vm6, %v170_v52, %v186_v53  ;;  %v189_v58 = vsel %vm177_vm4, %v167_v51, %v170_v52  ;;  %v191_v62 = vsel %vm179_vm6, %v173_v47, %v190_v54 }
 0x133   :  { %v183_v60 = vsel %vm179_vm6, %v167_v51, %v182_v55  ;;  %v188_v61 = vsel %vm178_vm5, %v185_v56, %v187_v57  ;;  %v192_v63 = vsel %vm178_vm5, %v189_v58, %v191_v62 }
 0x134   :  { %v512_v0 = vmul.u32.u64.low %v193_v34, %v188_v61  ;;  %v513_v1 = vmul.u32.u64.high %v193_v34, %v188_v61, %v512_v0  ;;  %v515_v2 = vmul.u32.u64.low %v193_v34, %v192_v63  ;;  %v516_v3 = vmul.u32.u64.high %v193_v34, %v192_v63, %v515_v2 }
 0x135   :  { %v184_v4 = vsel %vm178_vm5, %v181_v59, %v183_v60 }
 0x136   :  { %v203_v5 = vadd.s32 1, %v513_v1  ;;  %v200_v6 = vmul.u32 %v193_v34, %v184_v4  ;;  %vm202_vm7 = vc.u32 %v516_v3, %v512_v0  ;;  %v201_v19 = vadd.s32 %v512_v0, %v516_v3 }
 0x138   :  { %v204_v7 = vsel %vm202_vm7, %v203_v5, %v513_v1 }
 0x139   :  { %v205_v8 = vadd.s32 %v204_v7, %v200_v6 }
 0x13b   :  { %v206_v9 = vadd.s32 536870912, %v205_v8 }
 0x13d   :  { %v207_v10 = vshrl.u32 %v206_v9, 30 }
 0x13f   :  { %v208_v11 = vshll.u32 %v207_v10, 30  ;;  %v231_v32 = vsub.s32 4, %v207_v10 }
 0x141   :  { %v209_v12 = vsub.s32 %v205_v8, %v208_v11  ;;  %v232_v35 = vsel %vm147_vm9, %v231_v32, %v207_v10 }
 0x142   :  { %v234_v37 = vsel %vm146_vm10, 0, %v232_v35 }
 0x143   :  { %v211_v13 = vsub.s32 0, %v209_v12  ;;  %v238_v38 = vadd.s32 3, %v234_v37 }
 0x145   :  { %v270_v14 = vmin.u32 %v211_v13, %v209_v12  ;;  %v239_v39 = vand.u32 3, %v238_v38 }
 0x147   :  { %v213_v15 = vclz %v270_v14  ;;  %vm244_vm11 = vcmp.eq.s32.totalorder %v239_v39, 2  ;;  %vm241_vm12 = vcmp.eq.s32.totalorder %v239_v39, 0  ;;  %vm240_vm14 = vcmp.lt.s32.totalorder %v239_v39, 2 }
 0x149   :  { %v271_v16 = vadd.s32 4294967294, %v213_v15 }
 0x14b   :  { %vm272_vm8 = vcmp.lt.s32.totalorder %v271_v16, 0 }
 0x14c   :  { %v216_v18 = vsel %vm272_vm8, 0, %v271_v16 }
 0x14d   :  { %v217_v21 = vsub.s32 32, %v216_v18  ;;  %v221_v22 = vsub.s32 4294967266, %v216_v18  ;;  %v218_v23 = vshll.u32 %v209_v12, %v216_v18 }
 0x14f   :  { %v219_v24 = vshrl.u32 %v201_v19, %v217_v21  ;;  %v222_v25 = vadd.s32 127, %v221_v22 }
 0x151   :  { %v220_v26 = vor.u32 %v219_v24, %v218_v23  ;;  %v223_v27 = vshll.u32 %v222_v25, 23 }
 0x153   :  { %v224_v28 = vor.u32 4788187, %v223_v27  ;;  %v227_v30 = vcvt.s32.f32 %v220_v26 }
 0x155   :  { %v225_v29 = vand.u32 2147483647, %v224_v28 }
 0x157   :  { %v228_v31 = vmul.f32 %v227_v30, %v225_v29 }
 0x159   :  { %v229_v33 = vxor.u32 2147483648, %v228_v31 }
 0x15b   :  { %v230_v34 = vsel %vm147_vm9, %v229_v33, %v228_v31 }
 0x15c   :  { %v233_v36 = vsel %vm146_vm10, %v506_v17, %v230_v34 }
 0x15d   :  { %332 = vcosq.f32 %v233_v36 }
 0x15e   :  { %334 = vsinq.f32 %v233_v36 }
 0x167   :  { %v333_v40 = vpop.eup %332 }
 0x168   :  { %v335_v41 = vpop.eup %334  ;;  %v245_v43 = vxor.u32 2147483648, %v333_v40 }
 0x169   :  { %v242_v44 = vxor.u32 2147483648, %v335_v41 }
 0x16a   :  { %v246_v20 = vsel %vm244_vm11, %v245_v43, %v335_v41 }
 0x16b   :  { %v243_v45 = vsel %vm241_vm12, %v333_v40, %v242_v44 }
 0x16c   :  { %v247_v46 = vsel %vm240_vm14, %v243_v45, %v246_v20 }
 0x16d   :  { %v248_v47 = vsel %vm237_vm15, nan, %v247_v46 }
 0x16e   :  { %v249_v48 = vsel %vm144_vm13, %v248_v47, %v506_v17 }
 0x16f   :  { %250 = vst [vmem:[#allocation8] sm:$0xff] %v249_v48 }
 0x170   :  { %413 = shalt.err (!%p410_p0)
}
 0x171   :  { %s414_s30 = scalar_lea.hbm %s547_s4, 128 }
 0x172   :  { %p415_p1 = scmp.ne.s32.totalorder %s547_s4, %s414_s30  ;;  %p418_p2 = scmp.lt.u32.totalorder %s414_s30, %s547_s4 }
 0x174   :  { %p420_p3 = pnand %p418_p2, %p415_p1 }
 0x176   :  { %423 = shalt.err (!%p420_p3)
}
 0x177   :  { %260 = dma.vmem_to_hbm [thread:$0]  %s258_s27, 128, %s547_s4, [#allocation4]  }
 0x178   :  { %428 = dma.done.wait [#allocation4], 128  }
 0x179   :  { %429 = vsyncadd [#allocation4], 4294967168 }
 0x17a   :  { %264 = vsyncpa [#allocation3], 1 }
 0x17b   :  { %265 = vsyncpa [#allocation6], 1 }
 0x17c   :  { %266 = vsyncpa [#allocation4], 1 }

</bundles_post_ra>
